<compile_context>
chip_gen: v7x
topology: tpu7x:2x2x1
jax: 0.10.0
libtpu: 0.0.40
codegen_flags: <defaults>
</compile_context>

<pallas_src>
import jax
import jax.numpy as jnp
from jax.experimental import pallas as pl
from jax.experimental.pallas import tpu as pltpu


def bernoulli_decoder_kernel(z_ref, w1_ref, b1_ref, w2_ref, b2_ref,
                             w3_ref, b3_ref, logits_ref, probs_ref):
    """Fused decoder MLP on one batch tile: (TB, M) -> (TB, 784) logits + probs."""
    z = z_ref[...]
    # Layer 1: Linear + ReLU (MXU matmul, f32 accumulate; VPU max)
    h1 = jnp.dot(z, w1_ref[...], preferred_element_type=jnp.float32) + b1_ref[...]
    h1 = jnp.maximum(h1, 0.0)
    # Layer 2: Linear + ReLU
    h2 = jnp.dot(h1, w2_ref[...], preferred_element_type=jnp.float32) + b2_ref[...]
    h2 = jnp.maximum(h2, 0.0)
    # Layer 3: Linear -> Bernoulli logits
    logits = jnp.dot(h2, w3_ref[...], preferred_element_type=jnp.float32) + b3_ref[...]
    logits_ref[...] = logits
    # Bernoulli probs = sigmoid(logits); exp + approx reciprocal both go to the EUP.
    probs = pl.reciprocal(1.0 + jnp.exp(-logits), approx=True)
    probs_ref[...] = probs.astype(probs_ref.dtype)


def _round_up(x, m):
    return (x + m - 1) // m * m


def bernoulli_decoder_forward(z, params, *, block_batch=512):
    """Runs the fused Pallas kernel; returns (logits f32, probs bf16) of shape (B, 28, 28)."""
    w1, b1, w2, b2, w3, b3 = params
    B, M = z.shape
    H = w1.shape[1]
    OUT = w3.shape[1]  # 784

    # Batch tile: multiple of 8 (f32 sublane), capped for VMEM safety on all gens.
    TB = min(block_batch, _round_up(B, 8))
    B_pad = _round_up(B, TB)
    if B_pad != B:
        z = jnp.pad(z, ((0, B_pad - B), (0, 0)))

    grid = (B_pad // TB,)

    def resident(shape):
        # Weights/biases: same block every grid step -> stay in VMEM.
        return pl.BlockSpec(shape, lambda i: (0, 0))

    logits_flat, probs_flat = pl.pallas_call(
        bernoulli_decoder_kernel,
        out_shape=(
            jax.ShapeDtypeStruct((B_pad, OUT), jnp.float32),
            jax.ShapeDtypeStruct((B_pad, OUT), jnp.bfloat16),
        ),
        grid=grid,
        in_specs=[
            pl.BlockSpec((TB, M), lambda i: (i, 0)),   # z tile
            resident((M, H)), resident((1, H)),        # layer 1
            resident((H, H)), resident((1, H)),        # layer 2
            resident((H, OUT)), resident((1, OUT)),    # layer 3
        ],
        out_specs=(
            pl.BlockSpec((TB, OUT), lambda i: (i, 0)),
            pl.BlockSpec((TB, OUT), lambda i: (i, 0)),
        ),
        compiler_params=pltpu.CompilerParams(
            dimension_semantics=("parallel",),  # megacore sharding on v7x
        ),
    )(z, w1, b1, w2, b2, w3, b3)

    # Glue: drop batch padding, unflatten to the (batch, 28, 28) event shape of
    # Independent(Bernoulli, 2).
    logits = logits_flat[:B].reshape(B, 28, 28)
    probs = probs_flat[:B].reshape(B, 28, 28)
    return logits, probs


def init_params(key, latent_dim=8, hidden_dim=128, out_dim=784):
    """Deterministic synthetic init of the decoder_net parameters."""
    k1, k2, k3 = jax.random.split(key, 3)

    def linear_init(k, fan_in, fan_out):
        scale = 1.0 / jnp.sqrt(jnp.float32(fan_in))
        w = jax.random.uniform(k, (fan_in, fan_out), jnp.float32, -scale, scale)
        b = jnp.zeros((1, fan_out), jnp.float32)  # 2D bias row for TPU layout
        return w, b

    w1, b1 = linear_init(k1, latent_dim, hidden_dim)
    w2, b2 = linear_init(k2, hidden_dim, hidden_dim)
    w3, b3 = linear_init(k3, hidden_dim, out_dim)
    return (w1, b1, w2, b2, w3, b3)


def reference_forward(z, params):
    """Pure-JAX reference of the same decoder net (for correctness check)."""
    w1, b1, w2, b2, w3, b3 = params
    h1 = jnp.maximum(z @ w1 + b1, 0.0)
    h2 = jnp.maximum(h1 @ w2 + b2, 0.0)
    logits = h2 @ w3 + b3
    B = z.shape[0]
    return logits.reshape(B, 28, 28), jax.nn.sigmoid(logits).reshape(B, 28, 28)


if __name__ == "__main__":
    key = jax.random.PRNGKey(0)
    k_params, k_z = jax.random.split(key)

    BATCH, LATENT = 2, 8
    params = init_params(k_params, latent_dim=LATENT, hidden_dim=128, out_dim=784)

    # std parameter from __init__ (unused in forward, kept for parity with the module)
    std = jnp.ones((28, 28), jnp.float32) * 0.5  # noqa: F841
    # TODO(synk): td.Independent(td.Bernoulli(logits), 2) is a distribution object;
    # it is represented here by its (logits, probs) parameters.

    z = jax.random.normal(k_z, (BATCH, LATENT), dtype=jnp.float32)

    logits, probs = bernoulli_decoder_forward(z, params)
    jax.block_until_ready((logits, probs))

    ref_logits, ref_probs = reference_forward(z, params)
    assert logits.shape == (BATCH, 28, 28)
    assert probs.shape == (BATCH, 28, 28)
    # logits path is exact f32 matmuls
    assert jnp.allclose(logits, ref_logits, atol=1e-4, rtol=1e-4)
    # probs are bf16 + approx-reciprocal sigmoid; probs in [0,1] so absolute tol suffices
    assert jnp.allclose(probs.astype(jnp.float32), ref_probs, atol=2e-2)

    print("KERNEL_OK")
</pallas_src>

<mosaic_0001>
module attributes {stable_mosaic.version = 11 : i64} {
  func.func @bernoulli_decoder_kernel(%arg0: i32, %arg1: memref<8x8xf32, #tpu.memory_space<vmem>>, %arg2: memref<8x128xf32, #tpu.memory_space<vmem>>, %arg3: memref<1x128xf32, #tpu.memory_space<vmem>>, %arg4: memref<128x128xf32, #tpu.memory_space<vmem>>, %arg5: memref<1x128xf32, #tpu.memory_space<vmem>>, %arg6: memref<128x784xf32, #tpu.memory_space<vmem>>, %arg7: memref<1x784xf32, #tpu.memory_space<vmem>>, %arg8: memref<8x784xf32, #tpu.memory_space<vmem>>, %arg9: memref<8x784xbf16, #tpu.memory_space<vmem>>) attributes {dimension_semantics = [#tpu.dimension_semantics<parallel>], iteration_bounds = array<i64: 1>, scalar_prefetch = 0 : i64, scratch_operands = 0 : i64, tpu.core_type = #tpu.core_type<tc>, window_params = [{transform_indices = @transform_0, window_bounds = array<i64: 8, 8>}, {pipeline_mode = #tpu.pipeline_mode<synchronous>, transform_indices = @transform_1, window_bounds = array<i64: 8, 128>}, {pipeline_mode = #tpu.pipeline_mode<synchronous>, transform_indices = @transform_2, window_bounds = array<i64: 1, 128>}, {pipeline_mode = #tpu.pipeline_mode<synchronous>, transform_indices = @transform_3, window_bounds = array<i64: 128, 128>}, {pipeline_mode = #tpu.pipeline_mode<synchronous>, transform_indices = @transform_4, window_bounds = array<i64: 1, 128>}, {pipeline_mode = #tpu.pipeline_mode<synchronous>, transform_indices = @transform_5, window_bounds = array<i64: 128, 784>}, {pipeline_mode = #tpu.pipeline_mode<synchronous>, transform_indices = @transform_6, window_bounds = array<i64: 1, 784>}, {transform_indices = @transform_7, window_bounds = array<i64: 8, 784>}, {transform_indices = @transform_8, window_bounds = array<i64: 8, 784>}]} {
    %c0 = arith.constant 0 : index
    %c0_0 = arith.constant 0 : index
    %0 = vector.load %arg1[%c0, %c0_0] : memref<8x8xf32, #tpu.memory_space<vmem>>, vector<8x8xf32>
    %c0_1 = arith.constant 0 : index
    %c0_2 = arith.constant 0 : index
    %1 = vector.load %arg2[%c0_1, %c0_2] : memref<8x128xf32, #tpu.memory_space<vmem>>, vector<8x128xf32>
    %cst = arith.constant dense<0.000000e+00> : vector<8x128xf32>
    %2 = tpu.matmul %0, %1, %cst {dimension_numbers = #tpu.dot_dimension_numbers<[1], [0], [0], [1], [0, 0, 1, 1], [], []>} : vector<8x8xf32>, vector<8x128xf32>, vector<8x128xf32> -> vector<8x128xf32>
    %c0_3 = arith.constant 0 : index
    %c0_4 = arith.constant 0 : index
    %3 = vector.load %arg3[%c0_3, %c0_4] : memref<1x128xf32, #tpu.memory_space<vmem>>, vector<1x128xf32>
    %4 = vector.broadcast %3 : vector<1x128xf32> to vector<8x128xf32>
    %5 = arith.addf %2, %4 : vector<8x128xf32>
    %cst_5 = arith.constant 0.000000e+00 : f32
    %6 = vector.broadcast %cst_5 : f32 to vector<8x128xf32>
    %7 = arith.maximumf %5, %6 : vector<8x128xf32>
    %c0_6 = arith.constant 0 : index
    %c0_7 = arith.constant 0 : index
    %8 = vector.load %arg4[%c0_6, %c0_7] : memref<128x128xf32, #tpu.memory_space<vmem>>, vector<128x128xf32>
    %cst_8 = arith.constant dense<0.000000e+00> : vector<8x128xf32>
    %9 = tpu.matmul %7, %8, %cst_8 {dimension_numbers = #tpu.dot_dimension_numbers<[1], [0], [0], [1], [0, 0, 1, 1], [], []>} : vector<8x128xf32>, vector<128x128xf32>, vector<8x128xf32> -> vector<8x128xf32>
    %c0_9 = arith.constant 0 : index
    %c0_10 = arith.constant 0 : index
    %10 = vector.load %arg5[%c0_9, %c0_10] : memref<1x128xf32, #tpu.memory_space<vmem>>, vector<1x128xf32>
    %11 = vector.broadcast %10 : vector<1x128xf32> to vector<8x128xf32>
    %12 = arith.addf %9, %11 : vector<8x128xf32>
    %cst_11 = arith.constant 0.000000e+00 : f32
    %13 = vector.broadcast %cst_11 : f32 to vector<8x128xf32>
    %14 = arith.maximumf %12, %13 : vector<8x128xf32>
    %c0_12 = arith.constant 0 : index
    %c0_13 = arith.constant 0 : index
    %15 = vector.load %arg6[%c0_12, %c0_13] : memref<128x784xf32, #tpu.memory_space<vmem>>, vector<128x784xf32>
    %cst_14 = arith.constant dense<0.000000e+00> : vector<8x784xf32>
    %16 = tpu.matmul %14, %15, %cst_14 {dimension_numbers = #tpu.dot_dimension_numbers<[1], [0], [0], [1], [0, 0, 1, 1], [], []>} : vector<8x128xf32>, vector<128x784xf32>, vector<8x784xf32> -> vector<8x784xf32>
    %c0_15 = arith.constant 0 : index
    %c0_16 = arith.constant 0 : index
    %17 = vector.load %arg7[%c0_15, %c0_16] : memref<1x784xf32, #tpu.memory_space<vmem>>, vector<1x784xf32>
    %18 = vector.broadcast %17 : vector<1x784xf32> to vector<8x784xf32>
    %19 = arith.addf %16, %18 : vector<8x784xf32>
    %c0_17 = arith.constant 0 : index
    %c0_18 = arith.constant 0 : index
    %20 = vector.load %arg8[%c0_17, %c0_18] : memref<8x784xf32, #tpu.memory_space<vmem>>, vector<8x784xf32>
    tpu.vector_store %arg8[%c0_17, %c0_18], %19 {strides = array<i32>} : memref<8x784xf32, #tpu.memory_space<vmem>>, vector<8x784xf32>,
    %cst_19 = arith.constant 0.000000e+00 : f32
    %21 = vector.broadcast %cst_19 : f32 to vector<8x784xf32>
    %22 = arith.subf %21, %19 : vector<8x784xf32>
    %23 = math.exp %22 : vector<8x784xf32>
    %cst_20 = arith.constant 1.000000e+00 : f32
    %24 = vector.broadcast %cst_20 : f32 to vector<8x784xf32>
    %25 = arith.addf %24, %23 : vector<8x784xf32>
    %26 = tpu.reciprocal %25 {approx = true} : vector<8x784xf32> -> vector<8x784xf32>
    %27 = arith.truncf %26 : vector<8x784xf32> to vector<8x784xbf16>
    %c0_21 = arith.constant 0 : index
    %c0_22 = arith.constant 0 : index
    %28 = vector.load %arg9[%c0_21, %c0_22] : memref<8x784xbf16, #tpu.memory_space<vmem>>, vector<8x784xbf16>
    tpu.vector_store %arg9[%c0_21, %c0_22], %27 {strides = array<i32>} : memref<8x784xbf16, #tpu.memory_space<vmem>>, vector<8x784xbf16>,
    return
  }
  func.func @transform_0(%arg0: i32) -> (i32, i32) {
    %c0_i32 = arith.constant 0 : i32
    %c0_i32_0 = arith.constant 0 : i32
    return %arg0, %c0_i32 : i32, i32
  }
  func.func @transform_1(%arg0: i32) -> (i32, i32) {
    %c0_i32 = arith.constant 0 : i32
    %c0_i32_0 = arith.constant 0 : i32
    %c0_i32_1 = arith.constant 0 : i32
    return %c0_i32, %c0_i32_0 : i32, i32
  }
  func.func @transform_2(%arg0: i32) -> (i32, i32) {
    %c0_i32 = arith.constant 0 : i32
    %c0_i32_0 = arith.constant 0 : i32
    %c0_i32_1 = arith.constant 0 : i32
    return %c0_i32, %c0_i32_0 : i32, i32
  }
  func.func @transform_3(%arg0: i32) -> (i32, i32) {
    %c0_i32 = arith.constant 0 : i32
    %c0_i32_0 = arith.constant 0 : i32
    %c0_i32_1 = arith.constant 0 : i32
    return %c0_i32, %c0_i32_0 : i32, i32
  }
  func.func @transform_4(%arg0: i32) -> (i32, i32) {
    %c0_i32 = arith.constant 0 : i32
    %c0_i32_0 = arith.constant 0 : i32
    %c0_i32_1 = arith.constant 0 : i32
    return %c0_i32, %c0_i32_0 : i32, i32
  }
  func.func @transform_5(%arg0: i32) -> (i32, i32) {
    %c0_i32 = arith.constant 0 : i32
    %c0_i32_0 = arith.constant 0 : i32
    %c0_i32_1 = arith.constant 0 : i32
    return %c0_i32, %c0_i32_0 : i32, i32
  }
  func.func @transform_6(%arg0: i32) -> (i32, i32) {
    %c0_i32 = arith.constant 0 : i32
    %c0_i32_0 = arith.constant 0 : i32
    %c0_i32_1 = arith.constant 0 : i32
    return %c0_i32, %c0_i32_0 : i32, i32
  }
  func.func @transform_7(%arg0: i32) -> (i32, i32) {
    %c0_i32 = arith.constant 0 : i32
    %c0_i32_0 = arith.constant 0 : i32
    return %arg0, %c0_i32 : i32, i32
  }
  func.func @transform_8(%arg0: i32) -> (i32, i32) {
    %c0_i32 = arith.constant 0 : i32
    %c0_i32_0 = arith.constant 0 : i32
    return %arg0, %c0_i32 : i32, i32
  }
}

</mosaic_0001>

<bundles_post_ra>
// kernel: tpu_custom_call.1
= control target key start
LH: loop header
LB: loop body
LE: loop exit
PB: predicated region body
PF: predicated region fallthrough
CT: control target
= control target key end

     0   :  { %14 = vsyncpa [#allocation3], 0  ;;  %vm39_vm0 = vcmask 64512   ;;  %v1092_v2 = vmov 0.0   ;;  %vm1093_vm1 = vmmov 0   ;;  %v1094_v6 = vmov 0.0|0.0   ;;  %s1597_s0 = inlined_call_operand.vmem [shape: f32[8,8], index: 0, kind: input, shape index: {}]   ;;  %s1598_s1 = inlined_call_operand.vmem [shape: f32[8,128], index: 1, kind: input, shape index: {}]   ;;  %s1599_s2 = inlined_call_operand.vmem [shape: f32[1,128], index: 2, kind: input, shape index: {}]   ;;  %s1600_s3 = inlined_call_operand.vmem [shape: f32[128,128], index: 3, kind: input, shape index: {}]   ;;  %s1601_s4 = inlined_call_operand.vmem [shape: f32[1,128], index: 4, kind: input, shape index: {}]   ;;  %s1602_s5 = inlined_call_operand.vmem [shape: f32[128,784], index: 5, kind: input, shape index: {}]   ;;  %s1603_s6 = inlined_call_operand.vmem [shape: f32[1,784], index: 6, kind: input, shape index: {}]   ;;  %s1604_s7 = inlined_call_operand.hbm [shape: f32[8,784], index: 7, kind: output, shape index: {0}]   ;;  %s1605_s8 = inlined_call_operand.hbm [shape: bf16[8,784], index: 8, kind: output, shape index: {1}]  }
   0x1   :  { %v31_v0 = vld [vmem:[%s1598_s1] sm:$0xff]  ;;  %792 = vmatprep.subr.mxu0 %v1092_v2  ;;  %794 = vmatprep.mubr.msk.f32.mxu0 %vm1093_vm1, %v1092_v2  ;;  %v115_v4 = vld [vmem:[%s1600_s3 + $0x8] sm:$0xff]  ;;  %v116_v5 = vld [vmem:[%s1600_s3 + $0x10] sm:$0xff] }
   0x2   :  { %v30_v1 = vld [vmem:[%s1597_s0] sm:$0xff]  ;;  %793 = vmatpush3.msra.mxu0 %v31_v0  ;;  %867 = vmatprep.subr.bf16.mxu1 %v1094_v6  ;;  %v117_v8 = vld [vmem:[%s1600_s3 + $0x18] sm:$0xff]  ;;  %v119_v11 = vld [vmem:[%s1600_s3 + $0x28] sm:$0xff] }
   0x3   :  { %v114_v3 = vld [vmem:[%s1600_s3] sm:$0xff]  ;;  %795 = vmatmul.mubr.msk.f32.vlgmr.msra.gmra.mrb[0].mxu0 %vm39_vm0, %v30_v1  ;;  %829 = vmatprep.mubr.msk.f32.mxu1 %vm1093_vm1, %v1092_v2  ;;  %v871_v9 = vpack.c.bf16 %v117_v8, %v116_v5 }
   0x4   :  { %v868_v7 = vpack.c.bf16 %v115_v4, %v114_v3  ;;  %421 = vmatprep.mubr.f32.mxu0 %v1092_v2  ;;  %v118_v10 = vld [vmem:[%s1600_s3 + $0x20] sm:$0xff] }
   0x6   :  { %869 = vmatpush3.bf16.msra.mxu1 %v868_v7 }
   0x7   :  { %870 = vmatprep.subr.bf16.mxu1 %v1094_v6 }
   0x8   :  { %15 = vsyncpa [#allocation5], 0  ;;  %v874_v12 = vpack.c.bf16 %v119_v11, %v118_v10  ;;  %v120_v13 = vld [vmem:[%s1600_s3 + $0x30] sm:$0xff]  ;;  %v121_v14 = vld [vmem:[%s1600_s3 + $0x38] sm:$0xff]  ;;  %vm646_vm2 = vcmask 130048  }
   0x9   :  { %v877_v15 = vpack.c.bf16 %v121_v14, %v120_v13  ;;  %v122_v16 = vld [vmem:[%s1600_s3 + $0x40] sm:$0xff]  ;;  %v123_v17 = vld [vmem:[%s1600_s3 + $0x48] sm:$0xff]  ;;  %v124_v19 = vld [vmem:[%s1600_s3 + $0x50] sm:$0xff] }
   0xa   :  { %872 = vmatpush3.bf16.msra.mxu1 %v871_v9  ;;  %v880_v18 = vpack.c.bf16 %v123_v17, %v122_v16  ;;  %v125_v20 = vld [vmem:[%s1600_s3 + $0x58] sm:$0xff]  ;;  %v126_v22 = vld [vmem:[%s1600_s3 + $0x60] sm:$0xff]  ;;  %v127_v23 = vld [vmem:[%s1600_s3 + $0x68] sm:$0xff] }
   0xb   :  { %873 = vmatprep.subr.bf16.mxu1 %v1094_v6  ;;  %v883_v21 = vpack.c.bf16 %v125_v20, %v124_v19  ;;  %v886_v24 = vpack.c.bf16 %v127_v23, %v126_v22  ;;  %v128_v25 = vld [vmem:[%s1600_s3 + $0x70] sm:$0xff]  ;;  %v129_v26 = vld [vmem:[%s1600_s3 + $0x78] sm:$0xff]  ;;  %v209_v28 = vld [vmem:[%s1602_s5 + $0x8] sm:$0xff] }
   0xc   :  { %v889_v27 = vpack.c.bf16 %v129_v26, %v128_v25  ;;  %v216_v29 = vld [vmem:[%s1602_s5 + $0x40] sm:$0xff]  ;;  %v211_v30 = vld [vmem:[%s1602_s5 + $0x18] sm:$0xff]  ;;  %v218_v32 = vld [vmem:[%s1602_s5 + $0x50] sm:$0xff] }
   0xd   :  { %v891_v31 = vpack.c.bf16 %v216_v29, %v209_v28  ;;  %v208_v33 = vld [vmem:[%s1602_s5] sm:$0xff]  ;;  %v215_v34 = vld [vmem:[%s1602_s5 + $0x38] sm:$0xff]  ;;  %v923_v35 = vpack.c.bf16 %v218_v32, %v211_v30  ;;  %v230_v38 = vld [vmem:[%s1602_s5 + $0xb0] sm:$0xff] }
   0xe   :  { %875 = vmatpush3.bf16.msra.mxu1 %v874_v12  ;;  %v893_v36 = vpack.c.bf16 %v215_v34, %v208_v33  ;;  %v223_v37 = vld [vmem:[%s1602_s5 + $0x78] sm:$0xff]  ;;  %v222_v40 = vld [vmem:[%s1602_s5 + $0x70] sm:$0xff]  ;;  %v229_v41 = vld [vmem:[%s1602_s5 + $0xa8] sm:$0xff] }
   0xf   :  { %876 = vmatprep.subr.bf16.mxu1 %v1094_v6  ;;  %892 = vmatprep.subr.bf16.mxu0 %v891_v31  ;;  %v895_v39 = vpack.c.bf16 %v230_v38, %v223_v37  ;;  %v897_v42 = vpack.c.bf16 %v229_v41, %v222_v40  ;;  %v237_v43 = vld [vmem:[%s1602_s5 + $0xe8] sm:$0xff]  ;;  %v244_v44 = vld [vmem:[%s1602_s5 + $0x120] sm:$0xff]  ;;  %v243_v47 = vld [vmem:[%s1602_s5 + $0x118] sm:$0xff] }
  0x10   :  { %894 = vmatpush1.bf16.msra.mxu0 %v893_v36  ;;  %v899_v45 = vpack.c.bf16 %v244_v44, %v237_v43  ;;  %v236_v46 = vld [vmem:[%s1602_s5 + $0xe0] sm:$0xff]  ;;  %v251_v49 = vld [vmem:[%s1602_s5 + $0x158] sm:$0xff]  ;;  %v258_v50 = vld [vmem:[%s1602_s5 + $0x190] sm:$0xff] }
  0x11   :  { %896 = vmatprep.subr.bf16.mxu0 %v895_v39  ;;  %v901_v48 = vpack.c.bf16 %v243_v47, %v236_v46  ;;  %v903_v51 = vpack.c.bf16 %v258_v50, %v251_v49  ;;  %v250_v52 = vld [vmem:[%s1602_s5 + $0x150] sm:$0xff]  ;;  %v257_v53 = vld [vmem:[%s1602_s5 + $0x188] sm:$0xff]  ;;  %v272_v56 = vld [vmem:[%s1602_s5 + $0x200] sm:$0xff] }
  0x12   :  { %878 = vmatpush3.bf16.msra.mxu1 %v877_v15  ;;  %v905_v54 = vpack.c.bf16 %v257_v53, %v250_v52  ;;  %v265_v55 = vld [vmem:[%s1602_s5 + $0x1c8] sm:$0xff]  ;;  %v264_v58 = vld [vmem:[%s1602_s5 + $0x1c0] sm:$0xff]  ;;  %v271_v59 = vld [vmem:[%s1602_s5 + $0x1f8] sm:$0xff] }
  0x13   :  { %879 = vmatprep.subr.bf16.mxu1 %v1094_v6  ;;  %v907_v57 = vpack.c.bf16 %v272_v56, %v265_v55  ;;  %v909_v60 = vpack.c.bf16 %v271_v59, %v264_v58  ;;  %v279_v61 = vld [vmem:[%s1602_s5 + $0x238] sm:$0xff]  ;;  %v286_v62 = vld [vmem:[%s1602_s5 + $0x270] sm:$0xff]  ;;  %v285_v1 = vld [vmem:[%s1602_s5 + $0x268] sm:$0xff] }
  0x14   :  { %898 = vmatpush1.bf16.msra.mxu0 %v897_v42  ;;  %v911_v63 = vpack.c.bf16 %v286_v62, %v279_v61  ;;  %v278_v0 = vld [vmem:[%s1602_s5 + $0x230] sm:$0xff]  ;;  %v293_v4 = vld [vmem:[%s1602_s5 + $0x2a8] sm:$0xff]  ;;  %v300_v5 = vld [vmem:[%s1602_s5 + $0x2e0] sm:$0xff] }
  0x15   :  { %900 = vmatprep.subr.bf16.mxu0 %v899_v45  ;;  %v913_v3 = vpack.c.bf16 %v285_v1, %v278_v0  ;;  %v915_v7 = vpack.c.bf16 %v300_v5, %v293_v4  ;;  %v292_v8 = vld [vmem:[%s1602_s5 + $0x2a0] sm:$0xff]  ;;  %v299_v9 = vld [vmem:[%s1602_s5 + $0x2d8] sm:$0xff]  ;;  %v210_v12 = vld [vmem:[%s1602_s5 + $0x10] sm:$0xff] }
  0x16   :  { %881 = vmatpush3.bf16.msra.mxu1 %v880_v18  ;;  %v917_v10 = vpack.c.bf16 %v299_v9, %v292_v8  ;;  %v745_v11 = vld [vmem:[%s1599_s2] ss:$0 sm:$0xff]  ;;  %v217_v13 = vld [vmem:[%s1602_s5 + $0x48] sm:$0xff]  ;;  %v231_v23 = vld [vmem:[%s1602_s5 + $0xb8] sm:$0xff] }
  0x17   :  { %882 = vmatprep.subr.bf16.mxu1 %v1094_v6  ;;  %v225_v15 = vld [vmem:[%s1602_s5 + $0x88] sm:$0xff]  ;;  %v232_v16 = vld [vmem:[%s1602_s5 + $0xc0] sm:$0xff]  ;;  %v925_v19 = vpack.c.bf16 %v217_v13, %v210_v12  ;;  %v246_v25 = vld [vmem:[%s1602_s5 + $0x130] sm:$0xff] }
  0x18   :  { %902 = vmatpush1.bf16.msra.mxu0 %v901_v48  ;;  %v224_v22 = vld [vmem:[%s1602_s5 + $0x80] sm:$0xff]  ;;  %v238_v28 = vld [vmem:[%s1602_s5 + $0xf0] sm:$0xff]  ;;  %v245_v29 = vld [vmem:[%s1602_s5 + $0x128] sm:$0xff] }
  0x19   :  { %904 = vmatprep.subr.bf16.mxu0 %v903_v51  ;;  %v929_v26 = vpack.c.bf16 %v231_v23, %v224_v22  ;;  %v253_v30 = vld [vmem:[%s1602_s5 + $0x168] sm:$0xff]  ;;  %v260_v31 = vld [vmem:[%s1602_s5 + $0x1a0] sm:$0xff]  ;;  %v933_v32 = vpack.c.bf16 %v245_v29, %v238_v28  ;;  %v267_v36 = vld [vmem:[%s1602_s5 + $0x1d8] sm:$0xff] }
  0x1a   :  { %884 = vmatpush3.bf16.msra.mxu1 %v883_v21  ;;  %v927_v21 = vpack.c.bf16 %v232_v16, %v225_v15  ;;  %v935_v33 = vpack.c.bf16 %v260_v31, %v253_v30  ;;  %v252_v34 = vld [vmem:[%s1602_s5 + $0x160] sm:$0xff]  ;;  %v274_v37 = vld [vmem:[%s1602_s5 + $0x210] sm:$0xff]  ;;  %v273_v41 = vld [vmem:[%s1602_s5 + $0x208] sm:$0xff] }
  0x1b   :  { %885 = vmatprep.subr.bf16.mxu1 %v1094_v6  ;;  %v939_v39 = vpack.c.bf16 %v274_v37, %v267_v36  ;;  %v266_v40 = vld [vmem:[%s1602_s5 + $0x1d0] sm:$0xff]  ;;  %v281_v42 = vld [vmem:[%s1602_s5 + $0x248] sm:$0xff]  ;;  %v288_v43 = vld [vmem:[%s1602_s5 + $0x280] sm:$0xff] }
  0x1c   :  { %906 = vmatpush1.bf16.msra.mxu0 %v905_v54  ;;  %v941_v44 = vpack.c.bf16 %v273_v41, %v266_v40  ;;  %v943_v45 = vpack.c.bf16 %v288_v43, %v281_v42  ;;  %v280_v46 = vld [vmem:[%s1602_s5 + $0x240] sm:$0xff]  ;;  %v287_v47 = vld [vmem:[%s1602_s5 + $0x278] sm:$0xff]  ;;  %v302_v49 = vld [vmem:[%s1602_s5 + $0x2f0] sm:$0xff] }
  0x1d   :  { %908 = vmatprep.subr.bf16.mxu0 %v907_v57  ;;  %v295_v48 = vld [vmem:[%s1602_s5 + $0x2b8] sm:$0xff]  ;;  %v945_v50 = vpack.c.bf16 %v287_v47, %v280_v46  ;;  %v294_v52 = vld [vmem:[%s1602_s5 + $0x2b0] sm:$0xff]  ;;  %v301_v53 = vld [vmem:[%s1602_s5 + $0x2e8] sm:$0xff] }
  0x1e   :  { %887 = vmatpush3.bf16.msra.mxu1 %v886_v24  ;;  %v239_v24 = vld [vmem:[%s1602_s5 + $0xf8] sm:$0xff]  ;;  %v947_v51 = vpack.c.bf16 %v302_v49, %v295_v48  ;;  %v949_v54 = vpack.c.bf16 %v301_v53, %v294_v52  ;;  %v314_v56 = vld [vmem:[%s1602_s5 + $0x350] sm:$0xff]  ;;  %v309_v57 = vld [vmem:[%s1602_s5 + $0x328] sm:$0xff] }
  0x1f   :  { %888 = vmatprep.subr.bf16.mxu1 %v1094_v6  ;;  %v307_v55 = vld [vmem:[%s1602_s5 + $0x318] sm:$0xff]  ;;  %v316_v59 = vld [vmem:[%s1602_s5 + $0x360] sm:$0xff]  ;;  %v313_v61 = vld [vmem:[%s1602_s5 + $0x348] sm:$0xff] }
  0x20   :  { %910 = vmatpush1.bf16.msra.mxu0 %v909_v60  ;;  %v919_v58 = vpack.c.bf16 %v314_v56, %v307_v55  ;;  %v306_v60 = vld [vmem:[%s1602_s5 + $0x310] sm:$0xff]  ;;  %v951_v62 = vpack.c.bf16 %v316_v59, %v309_v57  ;;  %v308_v0 = vld [vmem:[%s1602_s5 + $0x320] sm:$0xff]  ;;  %v315_v1 = vld [vmem:[%s1602_s5 + $0x358] sm:$0xff] }
  0x21   :  { %912 = vmatprep.subr.bf16.mxu0 %v911_v63  ;;  %v921_v63 = vpack.c.bf16 %v313_v61, %v306_v60  ;;  %v213_v4 = vld [vmem:[%s1602_s5 + $0x28] sm:$0xff]  ;;  %v220_v5 = vld [vmem:[%s1602_s5 + $0x60] sm:$0xff]  ;;  %v234_v15 = vld [vmem:[%s1602_s5 + $0xd0] sm:$0xff] }
  0x22   :  { %890 = vmatpush3.bf16.msra.mxu1 %v889_v27  ;;  %v931_v27 = vpack.c.bf16 %v246_v25, %v239_v24  ;;  %v747_v8 = vld [vmem:[%s1601_s4] ss:$0 sm:$0xff]  ;;  %v221_v12 = vld [vmem:[%s1602_s5 + $0x68] sm:$0xff]  ;;  %v235_v25 = vld [vmem:[%s1602_s5 + $0xd8] sm:$0xff] }
  0x23   :  { %924 = vmatprep.subr.bf16.mxu1 %v923_v35  ;;  %v259_v35 = vld [vmem:[%s1602_s5 + $0x198] sm:$0xff]  ;;  %v212_v9 = vld [vmem:[%s1602_s5 + $0x20] sm:$0xff]  ;;  %v233_v23 = vld [vmem:[%s1602_s5 + $0xc8] sm:$0xff] }
  0x24   :  { %914 = vmatpush1.bf16.msra.mxu0 %v913_v3  ;;  %v937_v38 = vpack.c.bf16 %v259_v35, %v252_v34  ;;  %v953_v3 = vpack.c.bf16 %v315_v1, %v308_v0  ;;  %v228_v24 = vld [vmem:[%s1602_s5 + $0xa0] sm:$0xff]  ;;  %v249_v34 = vld [vmem:[%s1602_s5 + $0x148] sm:$0xff]  ;;  %v255_v35 = vld [vmem:[%s1602_s5 + $0x178] sm:$0xff] }
  0x25   :  { %916 = vmatprep.subr.bf16.mxu0 %v915_v7  ;;  %v955_v7 = vpack.c.bf16 %v220_v5, %v213_v4  ;;  %v991_v29 = vpack.c.bf16 %v235_v25, %v228_v24  ;;  %v240_v30 = vld [vmem:[%s1602_s5 + $0x100] sm:$0xff]  ;;  %v262_v36 = vld [vmem:[%s1602_s5 + $0x1b0] sm:$0xff]  ;;  %v261_v41 = vld [vmem:[%s1602_s5 + $0x1a8] sm:$0xff] }
  0x26   :  { %v967_v40 = vpack.c.bf16 %v262_v36, %v255_v35  ;;  %v263_v42 = vld [vmem:[%s1602_s5 + $0x1b8] sm:$0xff]  ;;  %v269_v43 = vld [vmem:[%s1602_s5 + $0x1e8] sm:$0xff]  ;;  %v268_v47 = vld [vmem:[%s1602_s5 + $0x1e0] sm:$0xff] }
  0x27   :  { %v275_v49 = vld [vmem:[%s1602_s5 + $0x218] sm:$0xff]  ;;  %v290_v53 = vld [vmem:[%s1602_s5 + $0x290] sm:$0xff]  ;;  %v284_v59 = vld [vmem:[%s1602_s5 + $0x260] sm:$0xff] }
  0x28   :  { %918 = vmatpush1.bf16.msra.mxu0 %v917_v10  ;;  %v219_v10 = vld [vmem:[%s1602_s5 + $0x58] sm:$0xff]  ;;  %v282_v56 = vld [vmem:[%s1602_s5 + $0x250] sm:$0xff]  ;;  %v297_v61 = vld [vmem:[%s1602_s5 + $0x2c8] sm:$0xff] }
  0x29   :  { %920 = vmatprep.subr.bf16.mxu0 %v919_v58  ;;  %v283_v52 = vld [vmem:[%s1602_s5 + $0x258] sm:$0xff]  ;;  %v289_v58 = vld [vmem:[%s1602_s5 + $0x288] sm:$0xff]  ;;  %v296_v1 = vld [vmem:[%s1602_s5 + $0x2c0] sm:$0xff] }
  0x2a   :  { %v975_v57 = vpack.c.bf16 %v290_v53, %v283_v52  ;;  %v291_v60 = vld [vmem:[%s1602_s5 + $0x298] sm:$0xff]  ;;  %v298_v5 = vld [vmem:[%s1602_s5 + $0x2d0] sm:$0xff]  ;;  %v320_v24 = vld [vmem:[%s1603_s6] sm:$0x7f] }
  0x2b   :  { %v1003_v0 = vpack.c.bf16 %v291_v60, %v284_v59  ;;  %v303_v4 = vld [vmem:[%s1602_s5 + $0x2f8] sm:$0xff] }
  0x2c   :  { %922 = vmatpush1.bf16.msra.mxu0 %v921_v63  ;;  %v977_v63 = vpack.c.bf16 %v289_v58, %v282_v56 }
  0x2d   :  { %956 = vmatprep.subr.bf16.mxu0 %v955_v7  ;;  %v305_v7 = vld [vmem:[%s1602_s5 + $0x308] sm:$0xff] }
  0xd6   :  { %v109_v14 = vpop.f32.mrb[0].mxu0 }
  0xd7   :  { %v110_v17 = vadd.f32 %v745_v11, %v109_v14  ;;  %v796_v18 = vpop.f32.mrb[1].mxu0  ;;  %v214_v11 = vld [vmem:[%s1602_s5 + $0x30] sm:$0xff]  ;;  %v227_v14 = vld [vmem:[%s1602_s5 + $0x98] sm:$0xff] }
  0xd8   :  { %v957_v18 = vpack.c.bf16 %v219_v10, %v212_v9  ;;  %v959_v22 = vpack.c.bf16 %v234_v15, %v227_v14  ;;  %v318_v9 = vld [vmem:[%s1602_s5 + $0x370] sm:$0xff]  ;;  %v981_v10 = vpack.c.bf16 %v303_v4, %v296_v1  ;;  %v317_v14 = vld [vmem:[%s1602_s5 + $0x368] sm:$0xff]  ;;  %v312_v15 = vld [vmem:[%s1602_s5 + $0x340] sm:$0xff] }
  0xd9   :  { %v113_v20 = vmax.f32 %v110_v17, 0.0 }
  0xdb   :  { %830 = vmatmul.mubr.f32.vlgmr.msra.gmra.mrb[0].mxu1 %v113_v20  ;;  %v226_v20 = vld [vmem:[%s1602_s5 + $0x90] sm:$0xff] }
  0xdc   :  { %926 = vmatpush1.bf16.msra.mxu1 %v925_v19  ;;  %492 = vmatprep.mubr.f32.mxu1 %v1092_v2  ;;  %v988_v19 = vpack.c.bf16 %v221_v12, %v214_v11  ;;  %v961_v28 = vpack.c.bf16 %v233_v23, %v226_v20  ;;  %v1006_v11 = vpack.c.bf16 %v305_v7, %v298_v5  ;;  %v310_v12 = vld [vmem:[%s1602_s5 + $0x330] sm:$0xff] }
  0xdd   :  { %928 = vmatprep.subr.bf16.mxu1 %v927_v21 }
  0xe0   :  { %930 = vmatpush1.bf16.msra.mxu1 %v929_v26  ;;  %v241_v26 = vld [vmem:[%s1602_s5 + $0x108] sm:$0xff] }
  0xe1   :  { %932 = vmatprep.subr.bf16.mxu1 %v931_v27  ;;  %v248_v27 = vld [vmem:[%s1602_s5 + $0x140] sm:$0xff] }
  0xe2   :  { %v963_v31 = vpack.c.bf16 %v248_v27, %v241_v26 }
  0xe4   :  { %934 = vmatpush1.bf16.msra.mxu1 %v933_v32  ;;  %v247_v32 = vld [vmem:[%s1602_s5 + $0x138] sm:$0xff] }
  0xe5   :  { %936 = vmatprep.subr.bf16.mxu1 %v935_v33  ;;  %v242_v33 = vld [vmem:[%s1602_s5 + $0x110] sm:$0xff]  ;;  %v965_v37 = vpack.c.bf16 %v247_v32, %v240_v30 }
  0xe8   :  { %938 = vmatpush1.bf16.msra.mxu1 %v937_v38  ;;  %v994_v38 = vpack.c.bf16 %v249_v34, %v242_v33 }
  0xe9   :  { %940 = vmatprep.subr.bf16.mxu1 %v939_v39  ;;  %v254_v39 = vld [vmem:[%s1602_s5 + $0x170] sm:$0xff] }
  0xec   :  { %942 = vmatpush1.bf16.msra.mxu1 %v941_v44  ;;  %v276_v44 = vld [vmem:[%s1602_s5 + $0x220] sm:$0xff] }
  0xed   :  { %944 = vmatprep.subr.bf16.mxu1 %v943_v45  ;;  %v969_v45 = vpack.c.bf16 %v261_v41, %v254_v39  ;;  %v971_v48 = vpack.c.bf16 %v276_v44, %v269_v43 }
  0xf0   :  { %946 = vmatpush1.bf16.msra.mxu1 %v945_v50  ;;  %v270_v50 = vld [vmem:[%s1602_s5 + $0x1f0] sm:$0xff] }
  0xf1   :  { %948 = vmatprep.subr.bf16.mxu1 %v947_v51  ;;  %v277_v51 = vld [vmem:[%s1602_s5 + $0x228] sm:$0xff] }
  0xf2   :  { %v1000_v55 = vpack.c.bf16 %v277_v51, %v270_v50 }
  0xf4   :  { %950 = vmatpush1.bf16.msra.mxu1 %v949_v54  ;;  %v973_v54 = vpack.c.bf16 %v275_v49, %v268_v47 }
  0xf5   :  { %952 = vmatprep.subr.bf16.mxu1 %v951_v62  ;;  %v304_v62 = vld [vmem:[%s1602_s5 + $0x300] sm:$0xff] }
  0xf8   :  { %954 = vmatpush1.bf16.msra.mxu1 %v953_v3  ;;  %v979_v3 = vpack.c.bf16 %v304_v62, %v297_v61 }
  0xf9   :  { %987 = vmatprep.subr.bf16.mxu1 %v1094_v6 }
 0x1ae   :  { %v203_v13 = vpop.f32.mrb[0].mxu1 }
 0x1af   :  { %v204_v16 = vadd.f32 %v747_v8, %v203_v13  ;;  %v831_v17 = vpop.f32.mrb[1].mxu1  ;;  %v311_v8 = vld [vmem:[%s1602_s5 + $0x338] sm:$0xff] }
 0x1b0   :  { %v983_v13 = vpack.c.bf16 %v318_v9, %v311_v8  ;;  %v985_v17 = vpack.c.bf16 %v317_v14, %v310_v12 }
 0x1b1   :  { %v1437_v21 = vmax.f32 %v204_v16, 0.0  ;;  %v319_v16 = vld [vmem:[%s1602_s5 + $0x378] sm:$0xff] }
 0x1b3   :  { %422 = vmatmul.mubr.f32.vlgmr.msra.gmra.mrb[2].mxu0 %v1437_v21  ;;  %493 = vmatmul.mubr.f32.vlgmr.msra.gmra.mrb[2].mxu1 %v1437_v21 }
 0x1b4   :  { %958 = vmatpush1.bf16.msra.mxu0 %v957_v18  ;;  %989 = vmatpush3.bf16.msra.mxu1 %v988_v19  ;;  %v1009_v18 = vpack.c.bf16 %v319_v16, %v312_v15  ;;  %v322_v19 = vlaneseq }
 0x1b5   :  { %960 = vmatprep.subr.bf16.mxu0 %v959_v22  ;;  %990 = vmatprep.subr.bf16.mxu1 %v1094_v6 }
 0x1b6   :  { %563 = vmatprep.mubr.f32.mxu0 %v1092_v2  ;;  %864 = vmatprep.mubr.msk.f32.mxu1 %vm1093_vm1, %v1092_v2  ;;  %v256_v2 = vld [vmem:[%s1602_s5 + $0x180] sm:$0xff]  ;;  %v323_v20 = vshrl.u32 %v322_v19, 7  ;;  %s1095_s5 = smov [#allocation2]  }
 0x1b7   :  { %v997_v46 = vpack.c.bf16 %v263_v42, %v256_v2  ;;  %s723_s6 = sshll.u32 %s1095_s5, 4  ;;  %s724_s6 = int_to_ptr.vmem [resolvable:$true] %s723_s6 }
 0x1b8   :  { %962 = vmatpush1.bf16.msra.mxu0 %v961_v28  ;;  %992 = vmatpush3.bf16.msra.mxu1 %v991_v29  ;;  %v324_v22 = vsub.s32 0, %v323_v20  ;;  %v332_v23 = vsub.s32 2, %v323_v20  ;;  %v328_v25 = vsub.s32 1, %v323_v20  ;;  %v336_v26 = vsub.s32 3, %v323_v20  ;;  %s1044_s2 = scalar_lea.vmem %s724_s6, 896  ;;  %p1049_p1 = scmp.lt.s32.totalorder %s724_s6, %s724_s6 }
 0x1b9   :  { %964 = vmatprep.subr.bf16.mxu0 %v963_v31  ;;  %993 = vmatprep.subr.bf16.mxu1 %v1094_v6  ;;  %v340_v52 = vsub.s32 4, %v323_v20  ;;  %v348_v53 = vsub.s32 6, %v323_v20  ;;  %p1045_p0 = scmp.ne.s32.totalorder %s724_s6, %s1044_s2  ;;  %p1050_p2 = scmp.lt.s32.totalorder %s1044_s2, %s1044_s2 }
 0x1ba   :  { %v325_v27 = vrot.slane %v320_v24, %v324_v22  ;;  %v333_v28 = vrot.slane %v320_v24, %v332_v23  ;;  %v329_v29 = vrot.slane %v320_v24, %v328_v25 }
 0x1bb   :  { %v349_v56 = vrot.slane %v320_v24, %v348_v53  ;;  %p1051_p3 = por %p1050_p2, %p1049_p1 }
 0x1bc   :  { %966 = vmatpush1.bf16.msra.mxu0 %v965_v37  ;;  %995 = vmatpush3.bf16.msra.mxu1 %v994_v38 }
 0x1bd   :  { %968 = vmatprep.subr.bf16.mxu0 %v967_v40  ;;  %996 = vmatprep.subr.bf16.mxu1 %v1094_v6  ;;  %p1052_p4 = pnand %p1051_p3, %p1045_p0 }
 0x1c0   :  { %970 = vmatpush1.bf16.msra.mxu0 %v969_v45  ;;  %998 = vmatpush3.bf16.msra.mxu1 %v997_v46 }
 0x1c1   :  { %972 = vmatprep.subr.bf16.mxu0 %v971_v48  ;;  %999 = vmatprep.subr.bf16.mxu1 %v1094_v6 }
 0x1c4   :  { %974 = vmatpush1.bf16.msra.mxu0 %v973_v54  ;;  %1001 = vmatpush3.bf16.msra.mxu1 %v1000_v55  ;;  %v344_v54 = vsub.s32 5, %v323_v20  ;;  %v341_v55 = vrot.slane %v320_v24, %v340_v52 }
 0x1c5   :  { %976 = vmatprep.subr.bf16.mxu0 %v975_v57  ;;  %1002 = vmatprep.subr.bf16.mxu1 %v1094_v6 }
 0x1c6   :  { %v345_v58 = vrot.slane %v320_v24, %v344_v54 }
 0x1c8   :  { %978 = vmatpush1.bf16.msra.mxu0 %v977_v63  ;;  %1004 = vmatpush3.bf16.msra.mxu1 %v1003_v0 }
 0x1c9   :  { %980 = vmatprep.subr.bf16.mxu0 %v979_v3  ;;  %1005 = vmatprep.subr.bf16.mxu1 %v1094_v6 }
 0x1cc   :  { %982 = vmatpush1.bf16.msra.mxu0 %v981_v10  ;;  %1007 = vmatpush3.bf16.msra.mxu1 %v1006_v11 }
 0x1cd   :  { %984 = vmatprep.subr.bf16.mxu0 %v983_v13  ;;  %1008 = vmatprep.subr.bf16.mxu1 %v1094_v6  ;;  %v337_v6 = vrot.slane %v320_v24, %v336_v26 }
 0x1d0   :  { %986 = vmatpush1.bf16.msra.mxu0 %v985_v17  ;;  %1010 = vmatpush3.bf16.msra.mxu1 %v1009_v18 }
 0x1d3   :  { %564 = vmatmul.mubr.f32.vlgmr.msra.gmra.mrb[4].mxu0 %v1437_v21  ;;  %865 = vmatmul.mubr.f32.vlgmr.msra.gmra.mrb[4].mxu1 %v1437_v21 }
 0x286   :  { %v423_v30 = vpop.f32.mrb[2].mxu0  ;;  %v494_v31 = vpop.f32.mrb[2].mxu1 }
 0x287   :  { %v424_v32 = vadd.f32 %v423_v30, %v325_v27  ;;  %v495_v33 = vadd.f32 %v494_v31, %v333_v28  ;;  %v425_v34 = vpop.f32.mrb[3].mxu0  ;;  %v496_v21 = vpop.f32.mrb[3].mxu1 }
 0x288   :  { %v426_v35 = vadd.f32 %v425_v34, %v329_v29  ;;  %v497_v36 = vadd.f32 %v496_v21, %v337_v6 }
 0x289   :  { %640 = vst [vmem:[#allocation2] sm:$0xff] %v424_v32  ;;  %v648_v37 = vsub.f32 0.0, %v424_v32  ;;  %642 = vst [vmem:[#allocation2 + $0x10] sm:$0xff] %v495_v33  ;;  %v650_v38 = vsub.f32 0.0, %v495_v33 }
 0x28a   :  { %641 = vst [vmem:[#allocation2 + $0x8] sm:$0xff] %v426_v35  ;;  %v649_v39 = vsub.f32 0.0, %v426_v35  ;;  %643 = vst [vmem:[#allocation2 + $0x18] sm:$0xff] %v497_v36  ;;  %v651_v40 = vsub.f32 0.0, %v497_v36 }
 0x28b   :  { %v655_v41 = vmul.f32 1.442695, %v648_v37  ;;  %v659_v2 = vmul.f32 1.442695, %v650_v38 }
 0x28c   :  { %v657_v42 = vmul.f32 1.442695, %v649_v39  ;;  %v661_v43 = vmul.f32 1.442695, %v651_v40 }
 0x28d   :  { %1016 = vpow2.f32 %v655_v41 }
 0x28e   :  { %1018 = vpow2.f32 %v659_v2 }
 0x28f   :  { %1020 = vpow2.f32 %v657_v42 }
 0x290   :  { %1022 = vpow2.f32 %v661_v43 }
 0x297   :  { %v1017_v44 = vpop.eup %1016 }
 0x298   :  { %v1019_v45 = vpop.eup %1018  ;;  %v669_v46 = vadd.f32 1.0, %v1017_v44 }
 0x299   :  { %v1021_v47 = vpop.eup %1020  ;;  %v671_v48 = vadd.f32 1.0, %v1019_v45 }
 0x29a   :  { %v1023_v49 = vpop.eup %1022  ;;  %1024 = vrcp.f32 %v669_v46  ;;  %v670_v50 = vadd.f32 1.0, %v1021_v47 }
 0x29b   :  { %1026 = vrcp.f32 %v671_v48  ;;  %v672_v51 = vadd.f32 1.0, %v1023_v49 }
 0x29c   :  { %1028 = vrcp.f32 %v670_v50 }
 0x29d   :  { %1030 = vrcp.f32 %v672_v51 }
 0x2a4   :  { %v1025_v57 = vpop.eup %1024 }
 0x2a5   :  { %v1027_v59 = vpop.eup %1026 }
 0x2a6   :  { %v1029_v60 = vpop.eup %1028  ;;  %v565_v61 = vpop.f32.mrb[4].mxu0 }
 0x2a7   :  { %v636_v62 = vpop.f32.mrb[4].mxu1  ;;  %v1031_v63 = vpop.eup %1030  ;;  %v566_v0 = vadd.f32 %v565_v61, %v341_v55  ;;  %v752_v5 = vpack.c.bf16 %v1029_v60, %v1025_v57 }
 0x2a8   :  { %v637_v1 = vadd.f32 %v636_v62, %v349_v56  ;;  %v567_v3 = vpop.f32.mrb[5].mxu0  ;;  %v866_v4 = vpop.f32.mrb[5].mxu1  ;;  %v753_v8 = vpack.c.bf16 %v1031_v63, %v1027_v59 }
 0x2a9   :  { %v568_v7 = vadd.f32 %v567_v3, %v345_v58  ;;  %644 = vst [vmem:[#allocation2 + $0x20] sm:$0xff] %v566_v0  ;;  %v652_v9 = vsub.f32 0.0, %v566_v0  ;;  %712 = vst [vmem:[#allocation4] sm:$0xff] %v752_v5 }
 0x2aa   :  { %647 = vst.msk [vmem:[#allocation2 + $0x30] sm:$0xff] %vm646_vm2, %v637_v1  ;;  %v654_v10 = vsub.f32 0.0, %v637_v1  ;;  %713 = vst [vmem:[#allocation4 + $0x8] sm:$0xff] %v753_v8 }
 0x2ab   :  { %645 = vst [vmem:[#allocation2 + $0x28] sm:$0xff] %v568_v7  ;;  %v653_v11 = vsub.f32 0.0, %v568_v7  ;;  %v663_v12 = vmul.f32 1.442695, %v652_v9 }
 0x2ac   :  { %v667_v13 = vmul.f32 1.442695, %v654_v10 }
 0x2ad   :  { %1055 = shalt.err (!%p1052_p4)
}
 0x2ae   :  { %s1056_s13 = scalar_lea.hbm %s1604_s7, 896 }
 0x2af   :  { %p1057_p5 = scmp.ne.s32.totalorder %s1604_s7, %s1056_s13  ;;  %p1060_p6 = scmp.lt.u32.totalorder %s1056_s13, %s1604_s7 }
 0x2b1   :  { %p1062_p7 = pnand %p1060_p6, %p1057_p5 }
 0x2b3   :  { %1065 = shalt.err (!%p1062_p7)
}
 0x2b4   :  { %726 = dma.vmem_to_hbm [thread:$0]  %s724_s6, 896, %s1604_s7, [#allocation3]   ;;  %v665_v14 = vmul.f32 1.442695, %v653_v11  ;;  %1032 = vpow2.f32 %v663_v12  ;;  %vm715_vm3 = vcmask 125952  }
 0x2b5   :  { %1034 = vpow2.f32 %v667_v13  ;;  %s1096_s19 = smov [#allocation4]  }
 0x2b6   :  { %1036 = vpow2.f32 %v665_v14  ;;  %s733_s20 = sshll.u32 %s1096_s19, 4  ;;  %s734_s20 = int_to_ptr.vmem [resolvable:$true] %s733_s20 }
 0x2b7   :  { %s1066_s7 = scalar_lea.vmem %s734_s20, 448  ;;  %p1071_p9 = scmp.lt.s32.totalorder %s734_s20, %s734_s20 }
 0x2b8   :  { %p1067_p8 = scmp.ne.s32.totalorder %s734_s20, %s1066_s7  ;;  %p1072_p10 = scmp.lt.s32.totalorder %s1066_s7, %s1066_s7 }
 0x2ba   :  { %p1073_p11 = por %p1072_p10, %p1071_p9 }
 0x2bc   :  { %p1074_p12 = pnand %p1073_p11, %p1067_p8 }
 0x2be   :  { %v1033_v15 = vpop.eup %1032 }
 0x2bf   :  { %v1035_v16 = vpop.eup %1034  ;;  %v673_v17 = vadd.f32 1.0, %v1033_v15 }
 0x2c0   :  { %v1037_v18 = vpop.eup %1036  ;;  %v675_v19 = vadd.f32 1.0, %v1035_v16 }
 0x2c1   :  { %1038 = vrcp.f32 %v673_v17  ;;  %v674_v20 = vadd.f32 1.0, %v1037_v18 }
 0x2c2   :  { %1040 = vrcp.f32 %v675_v19 }
 0x2c3   :  { %1042 = vrcp.f32 %v674_v20 }
 0x2cb   :  { %v1039_v22 = vpop.eup %1038 }
 0x2cc   :  { %v1041_v23 = vpop.eup %1040 }
 0x2cd   :  { %v1043_v24 = vpop.eup %1042  ;;  %v755_v25 = vpack.c.bf16 %v1041_v23, %v1041_v23 }
 0x2ce   :  { %v754_v26 = vpack.c.bf16 %v1043_v24, %v1039_v22 }
 0x2cf   :  { %716 = vst.msk [vmem:[#allocation4 + $0x18] sm:$0xf] %vm715_vm3, %v755_v25 }
 0x2d0   :  { %714 = vst [vmem:[#allocation4 + $0x10] sm:$0xff] %v754_v26 }
 0x2d1   :  { %1077 = shalt.err (!%p1074_p12)
}
 0x2d2   :  { %s1078_s3 = scalar_lea.hbm %s1605_s8, 448 }
 0x2d3   :  { %p1079_p13 = scmp.ne.s32.totalorder %s1605_s8, %s1078_s3  ;;  %p1082_p0 = scmp.lt.u32.totalorder %s1078_s3, %s1605_s8 }
 0x2d5   :  { %p1084_p1 = pnand %p1082_p0, %p1079_p13 }
 0x2d7   :  { %1087 = shalt.err (!%p1084_p1)
}
 0x2d8   :  { %736 = dma.vmem_to_hbm [thread:$0]  %s734_s20, 448, %s1605_s8, [#allocation5]  }
 0x2d9   :  { %1088 = dma.done.wait [#allocation3], 896  }
 0x2da   :  { %1089 = vsyncadd [#allocation3], 4294966400 }
 0x2db   :  { %1090 = dma.done.wait [#allocation5], 448  }
 0x2dc   :  { %1091 = vsyncadd [#allocation5], 4294966848 }
 0x2dd   :  { %743 = vsyncpa [#allocation3], 1 }
 0x2de   :  { %744 = vsyncpa [#allocation5], 1 }

</bundles_post_ra>
